<compile_context>
chip_gen: v7x
topology: tpu7x:2x2x1
jax: 0.10.0
libtpu: 0.0.40
codegen_flags: <defaults>
</compile_context>

<pallas_src>
import jax
import jax.numpy as jnp
from jax import lax
from jax.experimental import pallas as pl
from jax.experimental.pallas import tpu as pltpu


def _gp_partial_kernel(alpha_ref, real_ref, fake_ref, w1t_ref, h_out, g_out):
    # alpha: (N,1) f32 (resident)        real/fake tile: (N,TK)
    # w1t tile: (HID,TK) lane-dense      h_out: (N,HID)   g_out: (HID,HID)
    k = pl.program_id(1)

    @pl.when(k == 0)
    def _init():
        h_out[...] = jnp.zeros_like(h_out)
        g_out[...] = jnp.zeros_like(g_out)

    # interpolates = alpha*fake + (1-alpha)*real == real + alpha*(fake - real)
    # (lerp in f32 -- v5e's VPU has no bf16)
    real_t = real_ref[...].astype(jnp.float32)
    x = real_t + alpha_ref[...] * (fake_ref[...].astype(jnp.float32) - real_t)

    w1_t = w1t_ref[...]                                   # (HID, TK)
    x_mm = x.astype(w1_t.dtype)
    contract_lane = (((1,), (1,)), ((), ()))              # contract the F-tile axis

    # forward partial sum: h += x_tile @ W1_tile
    h_out[...] += lax.dot_general(x_mm, w1_t, contract_lane,
                                  preferred_element_type=jnp.float32)
    # Gram partial sum:    G += W1_tile^T @ W1_tile
    g_out[...] += lax.dot_general(w1_t, w1_t, contract_lane,
                                  preferred_element_type=jnp.float32)


def _vmem_budget_bytes():
    """(streamed-tile budget, vmem_limit_bytes) chosen per TPU generation."""
    cap = 64 * 1024 * 1024                       # conservative fallback (v7x-sized)
    try:
        cap = int(getattr(pltpu.get_tpu_info(), "vmem_capacity_bytes", cap))
    except Exception:
        pass
    if cap <= 64 * 1024 * 1024:                  # v7x: 64 MiB physical VMEM
        return 20 * 1024 * 1024, 32 * 1024 * 1024
    return 48 * 1024 * 1024, 64 * 1024 * 1024    # v5e/v6e: 128 MiB physical VMEM


def _pick_f_tile(f, n, hid, budget_bytes, elem_bytes):
    """Largest lane-aligned TK dividing F whose double-buffered streamed working
    set (real + fake + W1^T tiles, sublane padding included) fits the budget."""
    if f % 128 != 0:
        return f                                  # single full-width block
    pad = lambda v: ((v + 7) // 8) * 8
    rows = 2 * pad(n) + pad(hid)                  # real + fake + w1t sublanes
    bytes_per_lane = 2 * rows * elem_bytes        # x2: double-buffered
    tk = (budget_bytes // bytes_per_lane) // 128 * 128
    tk = max(128, min(tk, f))
    while f % tk != 0:                            # keep the grid exact
        tk -= 128
    return tk


def gradient_penalty_loss(alpha, real_nchw, fake_nchw, w1, b1, w2,
                          *, stream_dtype=jnp.float32, f_tile=None):
    """alpha: (N,1,1,1); real/fake: (N,C,H,W); w1: (F,HID); b1: (HID,); w2: (HID,1)."""
    n = real_nchw.shape[0]
    f = real_nchw.size // n
    hid = w1.shape[1]

    real = real_nchw.reshape(n, f).astype(stream_dtype)
    fake = fake_nchw.reshape(n, f).astype(stream_dtype)
    alpha2d = alpha.reshape(n, 1).astype(jnp.float32)
    # One-time host transpose: lane-dense (HID, F) weight layout for streaming.
    w1t = jnp.asarray(w1).T.astype(stream_dtype)

    budget, vmem_limit = _vmem_budget_bytes()
    tk = f_tile if f_tile is not None else _pick_f_tile(
        f, n, hid, budget, jnp.dtype(stream_dtype).itemsize)
    assert f % tk == 0, (f, tk)
    kt_total = f // tk
    # Leading "parallel" axis: v7x's two TensorCores each take half of the F
    # reduction; on single-TC v5e/v6e it is just one extra (free) sequential split.
    num_splits = 2 if kt_total % 2 == 0 else 1
    kt_per = kt_total // num_splits

    h_parts, g_parts = pl.pallas_call(
        _gp_partial_kernel,
        out_shape=(jax.ShapeDtypeStruct((num_splits, n, hid), jnp.float32),
                   jax.ShapeDtypeStruct((num_splits, hid, hid), jnp.float32)),
        grid_spec=pltpu.PrefetchScalarGridSpec(
            num_scalar_prefetch=0,
            grid=(num_splits, kt_per),
            in_specs=[
                pl.BlockSpec((n, 1), lambda c, k: (0, 0)),                  # alpha (resident)
                pl.BlockSpec((n, tk), lambda c, k: (0, c * kt_per + k)),    # real  (F-tiled)
                pl.BlockSpec((n, tk), lambda c, k: (0, c * kt_per + k)),    # fake  (F-tiled)
                pl.BlockSpec((hid, tk), lambda c, k: (0, c * kt_per + k)),  # W1^T  (F-tiled)
            ],
            out_specs=[
                pl.BlockSpec((None, n, hid), lambda c, k: (c, 0, 0)),       # per-core h
                pl.BlockSpec((None, hid, hid), lambda c, k: (c, 0, 0)),     # per-core G
            ],
        ),
        compiler_params=pltpu.CompilerParams(
            dimension_semantics=("parallel", "arbitrary"),
            vmem_limit_bytes=vmem_limit,
        ),
    )(alpha2d, real, fake, w1t)

    # Tiny epilogue (N*HID + HID^2 elements): combine per-core partials and form
    # the penalty.  Analytic VJP of D(x)=relu(x@W1+b1)@W2+b2 wrt x with
    # grad_outputs = ones:  dD/dx = (relu'(h) * W2^T) @ W1^T, and
    # ||ga @ W1^T||^2 per row == rowsum((ga @ G) * ga) with G = W1^T W1.
    h = jnp.sum(h_parts, axis=0) + b1.reshape(1, hid).astype(jnp.float32)
    gram = jnp.sum(g_parts, axis=0)
    ga = jnp.where(h > 0.0, w2.reshape(1, hid).astype(jnp.float32), 0.0)
    sq = jnp.sum((ga @ gram) * ga, axis=1)
    norm = jnp.sqrt(sq)
    return jnp.mean((norm - 1.0) ** 2)


def _reference_loss(alpha, real_nchw, fake_nchw, w1, b1, w2, b2):
    """Pure-JAX reference using jax.vjp (mirrors torch.autograd.grad)."""
    n = real_nchw.shape[0]
    f = real_nchw.size // n
    real = real_nchw.reshape(n, f)
    fake = fake_nchw.reshape(n, f)
    x = alpha.reshape(n, 1) * fake + (1.0 - alpha.reshape(n, 1)) * real

    def disc(xx):
        h = jnp.maximum(xx @ w1 + b1, 0.0)
        return h @ w2 + b2

    y, vjp = jax.vjp(disc, x)
    (gx,) = vjp(jnp.ones_like(y))
    norm = jnp.linalg.norm(gx.reshape(n, -1), axis=1)
    return jnp.mean((norm - 1.0) ** 2)


if __name__ == "__main__":
    key = jax.random.PRNGKey(0)
    k_real, k_fake, k_alpha, k_w1, k_b1, k_w2 = jax.random.split(key, 6)

    N, C, H, W = 2, 4, 16, 16          # NCHW, as in PyTorch
    F = C * H * W                      # 1024
    HID = 32

    real = jax.random.normal(k_real, (N, C, H, W), dtype=jnp.float32)
    fake = jax.random.normal(k_fake, (N, C, H, W), dtype=jnp.float32)
    # torch.rand((N,1,1,1)) equivalent (drawn on the host, passed in)
    alpha = jax.random.uniform(k_alpha, (N, 1, 1, 1), dtype=jnp.float32)

    # Deterministic synthetic discriminator parameters.
    # TODO(synk): torch.autograd.grad over an arbitrary nn.Module D has no
    # in-kernel equivalent; D is fixed to relu(x@W1+b1)@W2+b2 with its VJP
    # hand-written inside the kernel.
    w1 = jax.random.normal(k_w1, (F, HID), dtype=jnp.float32) * 0.05
    b1 = jax.random.normal(k_b1, (HID,), dtype=jnp.float32) * 0.05
    w2 = jax.random.normal(k_w2, (HID, 1), dtype=jnp.float32) * 0.05
    b2 = jnp.zeros((1,), dtype=jnp.float32)

    ref = _reference_loss(alpha, real, fake, w1, b1, w2, b2)

    # Default path: VMEM-budget-derived TK (== full F at this toy size).
    loss = gradient_penalty_loss(alpha, real, fake, w1, b1, w2)
    loss = jax.block_until_ready(loss)
    assert jnp.allclose(loss, ref, rtol=1e-4, atol=1e-5), (loss, ref)

    # Also exercise the multi-tile + dual-split path (grid (2, 2)) explicitly.
    loss_tiled = gradient_penalty_loss(alpha, real, fake, w1, b1, w2, f_tile=256)
    loss_tiled = jax.block_until_ready(loss_tiled)
    assert jnp.allclose(loss_tiled, ref, rtol=1e-4, atol=1e-5), (loss_tiled, ref)

    print("KERNEL_OK")
</pallas_src>

<mosaic_0001>
module attributes {stable_mosaic.version = 11 : i64} {
  func.func @_gp_partial_kernel(%arg0: i32, %arg1: i32, %arg2: memref<2x1xf32, #tpu.memory_space<vmem>>, %arg3: memref<2x1024xf32, #tpu.memory_space<vmem>>, %arg4: memref<2x1024xf32, #tpu.memory_space<vmem>>, %arg5: memref<32x1024xf32, #tpu.memory_space<vmem>>, %arg6: memref<1x2x32xf32, #tpu.memory_space<vmem>>, %arg7: memref<1x32x32xf32, #tpu.memory_space<vmem>>) attributes {dimension_semantics = [#tpu.dimension_semantics<parallel>, #tpu.dimension_semantics<arbitrary>], iteration_bounds = array<i64: 1, 1>, scalar_prefetch = 0 : i64, scratch_operands = 0 : i64, tpu.core_type = #tpu.core_type<tc>, window_params = [{pipeline_mode = #tpu.pipeline_mode<synchronous>, transform_indices = @transform_0, window_bounds = array<i64: 2, 1>}, {transform_indices = @transform_1, window_bounds = array<i64: 2, 1024>}, {transform_indices = @transform_2, window_bounds = array<i64: 2, 1024>}, {transform_indices = @transform_3, window_bounds = array<i64: 32, 1024>}, {transform_indices = @transform_4, window_bounds = array<i64: 1, 2, 32>}, {transform_indices = @transform_5, window_bounds = array<i64: 1, 32, 32>}]} {
    %c0_i32 = arith.constant 0 : i32
    %0 = arith.cmpi eq, %arg1, %c0_i32 : i32
    %1 = arith.extui %0 : i1 to i32
    %c0_i32_0 = arith.constant 0 : i32
    %2 = arith.cmpi ne, %1, %c0_i32_0 : i32
    scf.if %2 {
      %cst_21 = arith.constant 0.000000e+00 : f32
      %25 = vector.broadcast %cst_21 : f32 to vector<2x32xf32>
      %c0_22 = arith.constant 0 : index
      %c0_23 = arith.constant 0 : index
      %c0_24 = arith.constant 0 : index
      %26 = vector.load %arg6[%c0_22, %c0_23, %c0_24] : memref<1x2x32xf32, #tpu.memory_space<vmem>>, vector<1x2x32xf32>
      %27 = vector.shape_cast %26 : vector<1x2x32xf32> to vector<2x32xf32>
      %28 = vector.shape_cast %25 : vector<2x32xf32> to vector<1x2x32xf32>
      tpu.vector_store %arg6[%c0_22, %c0_23, %c0_24], %28 {strides = array<i32>} : memref<1x2x32xf32, #tpu.memory_space<vmem>>, vector<1x2x32xf32>,
      %cst_25 = arith.constant 0.000000e+00 : f32
      %29 = vector.broadcast %cst_25 : f32 to vector<32x32xf32>
      %c0_26 = arith.constant 0 : index
      %c0_27 = arith.constant 0 : index
      %c0_28 = arith.constant 0 : index
      %30 = vector.load %arg7[%c0_26, %c0_27, %c0_28] : memref<1x32x32xf32, #tpu.memory_space<vmem>>, vector<1x32x32xf32>
      %31 = vector.shape_cast %30 : vector<1x32x32xf32> to vector<32x32xf32>
      %32 = vector.shape_cast %29 : vector<32x32xf32> to vector<1x32x32xf32>
      tpu.vector_store %arg7[%c0_26, %c0_27, %c0_28], %32 {strides = array<i32>} : memref<1x32x32xf32, #tpu.memory_space<vmem>>, vector<1x32x32xf32>,
    } else {
    }
    %c0 = arith.constant 0 : index
    %c0_1 = arith.constant 0 : index
    %3 = vector.load %arg3[%c0, %c0_1] : memref<2x1024xf32, #tpu.memory_space<vmem>>, vector<2x1024xf32>
    %c0_2 = arith.constant 0 : index
    %c0_3 = arith.constant 0 : index
    %4 = vector.load %arg2[%c0_2, %c0_3] : memref<2x1xf32, #tpu.memory_space<vmem>>, vector<2x1xf32>
    %c0_4 = arith.constant 0 : index
    %c0_5 = arith.constant 0 : index
    %5 = vector.load %arg4[%c0_4, %c0_5] : memref<2x1024xf32, #tpu.memory_space<vmem>>, vector<2x1024xf32>
    %6 = arith.subf %5, %3 : vector<2x1024xf32>
    %7 = vector.broadcast %4 : vector<2x1xf32> to vector<2x1024xf32>
    %8 = arith.mulf %7, %6 : vector<2x1024xf32>
    %9 = arith.addf %3, %8 : vector<2x1024xf32>
    %c0_6 = arith.constant 0 : index
    %c0_7 = arith.constant 0 : index
    %10 = vector.load %arg5[%c0_6, %c0_7] : memref<32x1024xf32, #tpu.memory_space<vmem>>, vector<32x1024xf32>
    %c0_8 = arith.constant 0 : index
    %c0_9 = arith.constant 0 : index
    %c0_10 = arith.constant 0 : index
    %11 = vector.load %arg6[%c0_8, %c0_9, %c0_10] : memref<1x2x32xf32, #tpu.memory_space<vmem>>, vector<1x2x32xf32>
    %12 = vector.shape_cast %11 : vector<1x2x32xf32> to vector<2x32xf32>
    %cst = arith.constant dense<0.000000e+00> : vector<2x32xf32>
    %13 = tpu.matmul %9, %10, %cst {dimension_numbers = #tpu.dot_dimension_numbers<[1], [1], [0], [0], [0, 0, 1, 0], [], []>} : vector<2x1024xf32>, vector<32x1024xf32>, vector<2x32xf32> -> vector<2x32xf32>
    %14 = arith.addf %12, %13 : vector<2x32xf32>
    %c0_11 = arith.constant 0 : index
    %c0_12 = arith.constant 0 : index
    %c0_13 = arith.constant 0 : index
    %15 = vector.load %arg6[%c0_11, %c0_12, %c0_13] : memref<1x2x32xf32, #tpu.memory_space<vmem>>, vector<1x2x32xf32>
    %16 = vector.shape_cast %15 : vector<1x2x32xf32> to vector<2x32xf32>
    %17 = vector.shape_cast %14 : vector<2x32xf32> to vector<1x2x32xf32>
    tpu.vector_store %arg6[%c0_11, %c0_12, %c0_13], %17 {strides = array<i32>} : memref<1x2x32xf32, #tpu.memory_space<vmem>>, vector<1x2x32xf32>,
    %c0_14 = arith.constant 0 : index
    %c0_15 = arith.constant 0 : index
    %c0_16 = arith.constant 0 : index
    %18 = vector.load %arg7[%c0_14, %c0_15, %c0_16] : memref<1x32x32xf32, #tpu.memory_space<vmem>>, vector<1x32x32xf32>
    %19 = vector.shape_cast %18 : vector<1x32x32xf32> to vector<32x32xf32>
    %cst_17 = arith.constant dense<0.000000e+00> : vector<32x32xf32>
    %20 = tpu.matmul %10, %10, %cst_17 {dimension_numbers = #tpu.dot_dimension_numbers<[1], [1], [0], [0], [0, 0, 1, 0], [], []>} : vector<32x1024xf32>, vector<32x1024xf32>, vector<32x32xf32> -> vector<32x32xf32>
    %21 = arith.addf %19, %20 : vector<32x32xf32>
    %c0_18 = arith.constant 0 : index
    %c0_19 = arith.constant 0 : index
    %c0_20 = arith.constant 0 : index
    %22 = vector.load %arg7[%c0_18, %c0_19, %c0_20] : memref<1x32x32xf32, #tpu.memory_space<vmem>>, vector<1x32x32xf32>
    %23 = vector.shape_cast %22 : vector<1x32x32xf32> to vector<32x32xf32>
    %24 = vector.shape_cast %21 : vector<32x32xf32> to vector<1x32x32xf32>
    tpu.vector_store %arg7[%c0_18, %c0_19, %c0_20], %24 {strides = array<i32>} : memref<1x32x32xf32, #tpu.memory_space<vmem>>, vector<1x32x32xf32>,
    return
  }
  func.func @transform_0(%arg0: i32, %arg1: i32) -> (i32, i32) {
    %c0_i32 = arith.constant 0 : i32
    %c0_i32_0 = arith.constant 0 : i32
    %c0_i32_1 = arith.constant 0 : i32
    return %c0_i32, %c0_i32_0 : i32, i32
  }
  func.func @transform_1(%arg0: i32, %arg1: i32) -> (i32, i32) {
    %c1_i32 = arith.constant 1 : i32
    %0 = arith.muli %arg0, %c1_i32 : i32
    %1 = arith.addi %0, %arg1 : i32
    %c0_i32 = arith.constant 0 : i32
    %c0_i32_0 = arith.constant 0 : i32
    return %c0_i32, %1 : i32, i32
  }
  func.func @transform_2(%arg0: i32, %arg1: i32) -> (i32, i32) {
    %c1_i32 = arith.constant 1 : i32
    %0 = arith.muli %arg0, %c1_i32 : i32
    %1 = arith.addi %0, %arg1 : i32
    %c0_i32 = arith.constant 0 : i32
    %c0_i32_0 = arith.constant 0 : i32
    return %c0_i32, %1 : i32, i32
  }
  func.func @transform_3(%arg0: i32, %arg1: i32) -> (i32, i32) {
    %c1_i32 = arith.constant 1 : i32
    %0 = arith.muli %arg0, %c1_i32 : i32
    %1 = arith.addi %0, %arg1 : i32
    %c0_i32 = arith.constant 0 : i32
    %c0_i32_0 = arith.constant 0 : i32
    return %c0_i32, %1 : i32, i32
  }
  func.func @transform_4(%arg0: i32, %arg1: i32) -> (i32, i32, i32) {
    %c0_i32 = arith.constant 0 : i32
    %c0_i32_0 = arith.constant 0 : i32
    %c0_i32_1 = arith.constant 0 : i32
    return %arg0, %c0_i32, %c0_i32_0 : i32, i32, i32
  }
  func.func @transform_5(%arg0: i32, %arg1: i32) -> (i32, i32, i32) {
    %c0_i32 = arith.constant 0 : i32
    %c0_i32_0 = arith.constant 0 : i32
    %c0_i32_1 = arith.constant 0 : i32
    return %arg0, %c0_i32, %c0_i32_0 : i32, i32, i32
  }
}

</mosaic_0001>

<bundles_post_ra>
// kernel: tpu_custom_call.1
= control target key start
LH: loop header
LB: loop body
LE: loop exit
PB: predicated region body
PF: predicated region fallthrough
CT: control target
= control target key end

     0   :  { %11 = vsyncpa [#allocation3], 0  ;;  %s1404_s0 = inlined_call_operand.vmem [shape: f32[2,1], index: 0, kind: input, shape index: {}]   ;;  %s1405_s1 = inlined_call_operand.hbm [shape: f32[2,1024], index: 1, kind: input, shape index: {}]   ;;  %s1406_s2 = inlined_call_operand.hbm [shape: f32[2,1024], index: 2, kind: input, shape index: {}]   ;;  %s1407_s3 = inlined_call_operand.hbm [shape: f32[32,1024], index: 3, kind: input, shape index: {}]   ;;  %s1408_s4 = inlined_call_operand.hbm [shape: f32[1,2,32], index: 4, kind: output, shape index: {0}]   ;;  %s1409_s5 = inlined_call_operand.hbm [shape: f32[1,32,32], index: 5, kind: output, shape index: {1}]  }
   0x1   :  { %12 = vsyncpa [#allocation6], 0 }
   0x2   :  { %13 = vsyncpa [#allocation4], 0 }
   0x3   :  { %14 = vsyncpa [#allocation10], 0  ;;  %s1137_s18 = smov [#allocation5]   ;;  %s1138_s20 = smov [#allocation2]  }
   0x4   :  { %s41_s19 = sshll.u32 %s1137_s18, 4  ;;  %s27_s21 = sshll.u32 %s1138_s20, 4  ;;  %s42_s19 = int_to_ptr.vmem [resolvable:$true] %s41_s19  ;;  %s28_s21 = int_to_ptr.vmem [resolvable:$true] %s27_s21 }
   0x5   :  { %s1019_s24 = scalar_lea.hbm %s1406_s2, 256 }
   0x6   :  { %p1020_p0 = scmp.ne.s32.totalorder %s1406_s2, %s1019_s24  ;;  %p1023_p1 = scmp.lt.u32.totalorder %s1019_s24, %s1406_s2 }
   0x8   :  { %p1025_p2 = pnand %p1023_p1, %p1020_p0 }
   0xa   :  { %1028 = shalt.err (!%p1025_p2)
}
   0xb   :  { %s1029_s29 = scalar_lea.vmem %s42_s19, 256  ;;  %p1034_p4 = scmp.lt.s32.totalorder %s42_s19, %s42_s19 }
   0xc   :  { %p1030_p3 = scmp.ne.s32.totalorder %s42_s19, %s1029_s29  ;;  %p1035_p5 = scmp.lt.s32.totalorder %s1029_s29, %s1029_s29 }
   0xe   :  { %p1036_p6 = por %p1035_p5, %p1034_p4 }
  0x10   :  { %p1037_p7 = pnand %p1036_p6, %p1030_p3 }
  0x12   :  { %1040 = shalt.err (!%p1037_p7)
}
  0x13   :  { %44 = dma.hbm_to_vmem [thread:$0]  %s1406_s2, 256, %s42_s19, [#allocation6]  }
  0x14   :  { %s1041_s9 = scalar_lea.hbm %s1405_s1, 256 }
  0x15   :  { %p1042_p8 = scmp.ne.s32.totalorder %s1405_s1, %s1041_s9  ;;  %p1045_p9 = scmp.lt.u32.totalorder %s1041_s9, %s1405_s1 }
  0x17   :  { %p1047_p10 = pnand %p1045_p9, %p1042_p8 }
  0x19   :  { %1050 = shalt.err (!%p1047_p10)
}
  0x1a   :  { %s1051_s14 = scalar_lea.vmem %s28_s21, 256  ;;  %p1056_p12 = scmp.lt.s32.totalorder %s28_s21, %s28_s21 }
  0x1b   :  { %p1052_p11 = scmp.ne.s32.totalorder %s28_s21, %s1051_s14  ;;  %p1057_p13 = scmp.lt.s32.totalorder %s1051_s14, %s1051_s14 }
  0x1d   :  { %p1058_p0 = por %p1057_p13, %p1056_p12 }
  0x1f   :  { %p1059_p1 = pnand %p1058_p0, %p1052_p11 }
  0x21   :  { %1062 = shalt.err (!%p1059_p1)
}
  0x22   :  { %30 = dma.hbm_to_vmem [thread:$0]  %s1405_s1, 256, %s28_s21, [#allocation3]  }
  0x23   :  { %s1139_s16 = smov [#allocation7]   ;;  %s1063_s20 = scalar_lea.hbm %s1407_s3, 4096 }
  0x24   :  { %s54_s17 = sshll.u32 %s1139_s16, 4  ;;  %p1064_p2 = scmp.ne.s32.totalorder %s1407_s3, %s1063_s20  ;;  %s55_s17 = int_to_ptr.vmem [resolvable:$true] %s54_s17 }
  0x25   :  { %p1067_p3 = scmp.lt.u32.totalorder %s1063_s20, %s1407_s3 }
  0x27   :  { %p1069_p4 = pnand %p1067_p3, %p1064_p2 }
  0x29   :  { %1072 = shalt.err (!%p1069_p4)
}
  0x2a   :  { %s1073_s26 = scalar_lea.vmem %s55_s17, 4096  ;;  %p1078_p6 = scmp.lt.s32.totalorder %s55_s17, %s55_s17 }
  0x2b   :  { %p1074_p5 = scmp.ne.s32.totalorder %s55_s17, %s1073_s26  ;;  %p1079_p7 = scmp.lt.s32.totalorder %s1073_s26, %s1073_s26 }
  0x2d   :  { %p1080_p8 = por %p1079_p7, %p1078_p6 }
  0x2f   :  { %p1081_p9 = pnand %p1080_p8, %p1074_p5 }
  0x31   :  { %1084 = shalt.err (!%p1081_p9)
}
  0x32   :  { %s1140_s1 = smov 1024   ;;  %s1141_s21 = smov 64  }
  0x33   :  { %60 = dma.hbm_to_vmem [thread:$0]  %s1407_s3, 4096, %s55_s17, [#allocation6], %s1140_s1, %s1140_s1, %s1141_s21  }
  0x34   :  { %1129 = dma.done.wait [#allocation3], 256  }
  0x35   :  { %1130 = vsyncadd [#allocation3], 4294967040 }
  0x36   :  { %1131 = dma.done.wait [#allocation6], 4352  }
  0x37   :  { %1132 = vsyncadd [#allocation6], 4294962944  ;;  %v1142_v0 = vmov 0   ;;  %v89_v1 = vld [vmem:[%s1404_s0] sm:$0x3]  ;;  %v1218_v2 = vld [vmem:[#allocation7 + $0x8] sm:$0xff]  ;;  %v105_v34 = vlaneseq }
  0x38   :  { %1018 = vset.pattern.permute.xlu0 %v1142_v0  ;;  %v1220_v3 = vld [vmem:[#allocation7 + $0x48] sm:$0xff]  ;;  %v1226_v5 = vld [vmem:[#allocation7] sm:$0xff]  ;;  %v1230_v7 = vld [vmem:[#allocation7 + $0x18] sm:$0xff]  ;;  %v1143_v32 = vmov 1983009808   ;;  %vm80_vm0 = vcmask 254976  }
  0x39   :  { %96 = vperm.xlu0 %1018, %v89_v1   ;;  %v1224_v4 = vpack.c.bf16 %v1220_v3, %v1218_v2  ;;  %v1228_v6 = vld [vmem:[#allocation7 + $0x40] sm:$0xff]  ;;  %v1236_v9 = vld [vmem:[#allocation7 + $0x58] sm:$0xff]  ;;  %v1238_v10 = vld [vmem:[#allocation7 + $0x10] sm:$0xff]  ;;  %v103_v33 = vunpack.c.l.s4 %v1143_v32  ;;  %v106_v41 = vshrl.u32 %v105_v34, 7  ;;  %vm82_vm1 = vcmask 261120   ;;  %s1145_s0 = smov [#allocation8]  }
  0x3a   :  { %v1234_v8 = vpack.c.bf16 %v1228_v6, %v1226_v5  ;;  %v1240_v11 = vld [vmem:[#allocation7 + $0x50] sm:$0xff]  ;;  %v1245_v12 = vpack.c.bf16 %v1236_v9, %v1230_v7  ;;  %v1251_v14 = vld [vmem:[#allocation7 + $0x88] sm:$0xff]  ;;  %v1260_v17 = vld [vmem:[#allocation7 + $0x98] sm:$0xff]  ;;  %s916_s3 = sshll.u32 %s1145_s0, 4  ;;  %s917_s3 = int_to_ptr.vmem [resolvable:$true] %s916_s3 }
  0x3b   :  { %943 = vmatprep.subr.bf16.mxu0 %v1224_v4  ;;  %v1249_v13 = vpack.c.bf16 %v1240_v11, %v1238_v10  ;;  %v1253_v15 = vld [vmem:[#allocation7 + $0xc8] sm:$0xff]  ;;  %v1262_v18 = vld [vmem:[#allocation7 + $0xd8] sm:$0xff]  ;;  %v1265_v19 = vld [vmem:[#allocation7 + $0x80] sm:$0xff]  ;;  %v104_v40 = vunpack.c.0.s8 %v103_v33  ;;  %s1085_s6 = scalar_lea.vmem %s917_s3, 32  ;;  %p1090_p11 = scmp.lt.s32.totalorder %s917_s3, %s917_s3 }
  0x3c   :  { %945 = vmatpush1.bf16.xpose.msra.mxu0 %v1234_v8  ;;  %v1258_v16 = vpack.c.bf16 %v1253_v15, %v1251_v14  ;;  %951 = vmatprep.subr.bf16.mxu1 %v1245_v12  ;;  %v1267_v20 = vld [vmem:[#allocation7 + $0xc0] sm:$0xff]  ;;  %v1271_v21 = vpack.c.bf16 %v1262_v18, %v1260_v17  ;;  %v1276_v22 = vld [vmem:[#allocation7 + $0x90] sm:$0xff]  ;;  %v1289_v26 = vld [vmem:[#allocation7 + $0x28] sm:$0xff]  ;;  %p1086_p10 = scmp.ne.s32.totalorder %s917_s3, %s1085_s6  ;;  %p1091_p12 = scmp.lt.s32.totalorder %s1085_s6, %s1085_s6 }
  0x3d   :  { %953 = vmatpush1.bf16.xpose.msra.mxu1 %v1249_v13  ;;  %v1278_v23 = vld [vmem:[#allocation7 + $0xd0] sm:$0xff]  ;;  %v1282_v24 = vpack.c.bf16 %v1267_v20, %v1265_v19  ;;  %v1291_v27 = vld [vmem:[#allocation7 + $0x68] sm:$0xff]  ;;  %v1299_v29 = vld [vmem:[#allocation7 + $0x38] sm:$0xff]  ;;  %v107_v44 = vsub.s32 %v104_v40, %v106_v41 }
  0x3e   :  { %947 = vmatprep.subr.bf16.mxu0 %v1258_v16  ;;  %955 = vmatprep.subr.bf16.mxu1 %v1271_v21  ;;  %v1286_v25 = vpack.c.bf16 %v1278_v23, %v1276_v22  ;;  %v1295_v28 = vpack.c.bf16 %v1291_v27, %v1289_v26  ;;  %v1301_v30 = vld [vmem:[#allocation7 + $0x78] sm:$0xff]  ;;  %v87_v35 = vld [vmem:[#allocation2] sm:$0xff]  ;;  %v90_v36 = vld [vmem:[#allocation5] sm:$0xff]  ;;  %p1092_p13 = por %p1091_p12, %p1090_p11 }
  0x3f   :  { %v1305_v31 = vpack.c.bf16 %v1301_v30, %v1299_v29  ;;  %v88_v37 = vld [vmem:[#allocation2 + $0x8] sm:$0xff]  ;;  %v91_v38 = vld [vmem:[#allocation5 + $0x8] sm:$0xff]  ;;  %v92_v39 = vsub.f32 %v90_v36, %v87_v35 }
  0x40   :  { %v93_v42 = vsub.f32 %v91_v38, %v88_v37  ;;  %p1093_p0 = pnand %p1092_p13, %p1086_p10 }
  0x41   :  { %v101_v43 = vcombine.high %v92_v39, %v92_v39  ;;  %v108_v46 = vrot.slane %v92_v39, %v107_v44 }
  0x42   :  { %v118_v45 = vcombine.high %v93_v42, %v93_v42  ;;  %v125_v48 = vrot.slane %v93_v42, %v107_v44  ;;  %v1308_v42 = vld [vmem:[#allocation7 + $0x20] sm:$0xff] }
  0x43   :  { %v115_v47 = vrot.slane %v101_v43, %v107_v44  ;;  %v116_v50 = vcombine.high %v108_v46, %v108_v46  ;;  %v1310_v43 = vld [vmem:[#allocation7 + $0x60] sm:$0xff] }
  0x44   :  { %949 = vmatpush1.bf16.xpose.msra.mxu0 %v1282_v24  ;;  %v132_v49 = vrot.slane %v118_v45, %v107_v44  ;;  %v133_v52 = vcombine.high %v125_v48, %v125_v48 }
  0x45   :  { %957 = vmatpush1.bf16.xpose.msra.mxu1 %v1286_v25  ;;  %959 = vmatprep.subr.bf16.mxu0 %v1295_v28  ;;  %v117_v51 = vcombine.high %v115_v47, %v115_v47 }
  0x46   :  { %967 = vmatprep.subr.bf16.mxu1 %v1305_v31  ;;  %v134_v53 = vcombine.high %v132_v49, %v132_v49 }
  0xb8   :  { %v97_v54 = vpop.permute.xlu0 %96 }
  0xb9   :  { %v143_v55 = vmul.f32 %v108_v46, %v97_v54  ;;  %v144_v56 = vmul.f32 %v116_v50, %v97_v54  ;;  %v145_v57 = vmul.f32 %v115_v47, %v97_v54  ;;  %v146_v58 = vmul.f32 %v117_v51, %v97_v54  ;;  %v1314_v50 = vld [vmem:[#allocation7 + $0x70] sm:$0xff] }
  0xba   :  { %v147_v59 = vmul.f32 %v125_v48, %v97_v54  ;;  %v148_v60 = vmul.f32 %v133_v52, %v97_v54  ;;  %v149_v61 = vmul.f32 %v132_v49, %v97_v54  ;;  %v150_v62 = vmul.f32 %v134_v53, %v97_v54  ;;  %v1312_v49 = vld [vmem:[#allocation7 + $0x30] sm:$0xff]  ;;  %v1316_v52 = vld [vmem:[#allocation7 + $0xa8] sm:$0xff] }
  0xbb   :  { %v159_v63 = vcombine.low %v143_v55, %v144_v56  ;;  %v160_v0 = vcombine.low %v145_v57, %v146_v58  ;;  %v960_v54 = vpack.c.bf16 %v1310_v43, %v1308_v42  ;;  %v1320_v55 = vld [vmem:[#allocation7 + $0xe8] sm:$0xff]  ;;  %v1322_v56 = vld [vmem:[#allocation7 + $0xb8] sm:$0xff] }
  0xbc   :  { %v176_v1 = vcombine.low %v147_v59, %v148_v60  ;;  %v177_v32 = vcombine.low %v149_v61, %v150_v62  ;;  %v968_v59 = vpack.c.bf16 %v1314_v50, %v1312_v49  ;;  %v962_v61 = vpack.c.bf16 %v1320_v55, %v1316_v52 }
  0xbd   :  { %v167_v33 = vrot.slane %v159_v63, %v107_v44  ;;  %v174_v34 = vrot.slane %v160_v0, %v107_v44  ;;  %v217_v0 = vld [vmem:[#allocation7 + $0xa0] sm:$0xff] }
  0xbe   :  { %v184_v36 = vrot.slane %v176_v1, %v107_v44  ;;  %v191_v38 = vrot.slane %v177_v32, %v107_v44  ;;  %v219_v1 = vld [vmem:[#allocation7 + $0xb0] sm:$0xff] }
  0xbf   :  { %v175_v39 = vcombine.low %v167_v33, %v174_v34  ;;  %v227_v32 = vld [vmem:[#allocation7 + $0xf0] sm:$0xff] }
  0xc0   :  { %v192_v40 = vcombine.low %v184_v36, %v191_v38  ;;  %v972_v34 = vpack.c.bf16 %v227_v32, %v219_v1 }
  0xc1   :  { %v195_v41 = vadd.f32 %v175_v39, %v87_v35 }
  0xc2   :  { %v196_v45 = vadd.f32 %v192_v40, %v88_v37  ;;  %v1324_v37 = vld [vmem:[#allocation7 + $0xf8] sm:$0xff] }
  0xc3   :  { %v239_v46 = vrot.slane %v195_v41, %v107_v44  ;;  %v232_v47 = vcombine.high %v195_v41, %v195_v41  ;;  %v970_v62 = vpack.c.bf16 %v1324_v37, %v1322_v56 }
  0xc4   :  { %v256_v48 = vrot.slane %v196_v45, %v107_v44  ;;  %v249_v51 = vcombine.high %v196_v45, %v196_v45 }
  0xc5   :  { %v247_v53 = vcombine.high %v239_v46, %v239_v46  ;;  %v246_v35 = vrot.slane %v232_v47, %v107_v44 }
  0xc6   :  { %v263_v57 = vrot.slane %v249_v51, %v107_v44  ;;  %v264_v60 = vcombine.high %v256_v48, %v256_v48  ;;  %v225_v44 = vld [vmem:[#allocation7 + $0xe0] sm:$0xff] }
  0xc7   :  { %338 = vmatprep.mubr.f32.mxu0 %v247_v53  ;;  %v248_v58 = vcombine.high %v246_v35, %v246_v35  ;;  %v964_v33 = vpack.c.bf16 %v225_v44, %v217_v0 }
  0xc8   :  { %339 = vmatmul.mubr.f32.vlgmr.msra.gmra.mrb[0].mxu0 %v239_v46  ;;  %v265_v63 = vcombine.high %v263_v57, %v263_v57 }
  0xc9   :  { %961 = vmatpush1.bf16.xpose.msra.mxu0 %v960_v54  ;;  %408 = vmatprep.mubr.f32.mxu1 %v248_v58 }
  0xca   :  { %478 = vmatprep.mubr.f32.mxu0 %v264_v60  ;;  %409 = vmatmul.mubr.f32.vlgmr.msra.gmra.mrb[0].mxu1 %v246_v35 }
  0xcb   :  { %969 = vmatpush1.bf16.xpose.msra.mxu1 %v968_v59  ;;  %548 = vmatprep.mubr.f32.mxu1 %v265_v63 }
  0xcc   :  { %963 = vmatprep.subr.bf16.mxu0 %v962_v61  ;;  %971 = vmatprep.subr.bf16.mxu1 %v970_v62 }
  0xd1   :  { %965 = vmatpush1.bf16.xpose.msra.mxu0 %v964_v33 }
  0xd2   :  { %975 = vmatprep.subr.bf16.mxu0 %v1224_v4 }
  0xd3   :  { %973 = vmatpush1.bf16.xpose.msra.mxu1 %v972_v34 }
  0xd4   :  { %983 = vmatprep.subr.bf16.mxu1 %v1245_v12 }
  0xd8   :  { %479 = vmatmul.mubr.f32.vlgmr.msra.gmra.mrb[2].mxu0 %v256_v48 }
  0xd9   :  { %977 = vmatpush1.bf16.xpose.msra.mxu0 %v1234_v8  ;;  %625 = vmatprep.mubr.f32.mxu0 %v1218_v2  ;;  %v1144_v2 = vmov 0.0  }
  0xda   :  { %549 = vmatmul.mubr.f32.vlgmr.msra.gmra.mrb[2].mxu1 %v263_v57  ;;  %979 = vmatprep.subr.bf16.mxu0 %v1258_v16  ;;  %81 = vst.msk [vmem:[#allocation8] sm:$0x3] %vm80_vm0, %v1144_v2 }
  0xdb   :  { %985 = vmatpush1.bf16.xpose.msra.mxu1 %v1249_v13  ;;  %710 = vmatprep.mubr.f32.mxu1 %v1230_v7  ;;  %83 = vst.msk [vmem:[#allocation9] sm:$0xff] %vm82_vm1, %v1144_v2  ;;  %84 = vst.msk [vmem:[#allocation9 + $0x8] sm:$0xff] %vm82_vm1, %v1144_v2 }
  0xdc   :  { %987 = vmatprep.subr.bf16.mxu1 %v1271_v21  ;;  %85 = vst.msk [vmem:[#allocation9 + $0x10] sm:$0xff] %vm82_vm1, %v1144_v2  ;;  %86 = vst.msk [vmem:[#allocation9 + $0x18] sm:$0xff] %vm82_vm1, %v1144_v2 }
  0xe1   :  { %981 = vmatpush1.bf16.xpose.msra.mxu0 %v1282_v24 }
  0xe2   :  { %991 = vmatprep.subr.bf16.mxu0 %v1295_v28 }
  0xe3   :  { %989 = vmatpush1.bf16.xpose.msra.mxu1 %v1286_v25 }
  0xe4   :  { %999 = vmatprep.subr.bf16.mxu1 %v1305_v31 }
  0xe8   :  { %626 = vmatmul.mubr.f32.vlgmr.msra.gmra.mrb[4].mxu0 %v1226_v5 }
  0xe9   :  { %993 = vmatpush1.bf16.xpose.msra.mxu0 %v960_v54  ;;  %630 = vmatprep.mubr.f32.mxu0 %v1220_v3 }
  0xea   :  { %711 = vmatmul.mubr.f32.vlgmr.msra.gmra.mrb[4].mxu1 %v1238_v10  ;;  %995 = vmatprep.subr.bf16.mxu0 %v962_v61 }
  0xeb   :  { %1001 = vmatpush1.bf16.xpose.msra.mxu1 %v968_v59  ;;  %715 = vmatprep.mubr.f32.mxu1 %v1236_v9 }
  0xec   :  { %631 = vmatmul.mubr.f32.gmra.mrb[6].mxu0 %v1228_v6  ;;  %1003 = vmatprep.subr.bf16.mxu1 %v970_v62 }
  0xed   :  { %635 = vmatprep.mubr.f32.mxu0 %v1251_v14 }
  0xee   :  { %716 = vmatmul.mubr.f32.gmra.mrb[6].mxu1 %v1240_v11  ;;  %v229_v11 = vld [vmem:[#allocation8] sm:$0x3] }
  0xef   :  { %720 = vmatprep.mubr.f32.mxu1 %v1260_v17 }
  0xf0   :  { %636 = vmatmul.mubr.f32.gmra.mrb[8].mxu0 %v1265_v19 }
  0xf1   :  { %997 = vmatpush1.bf16.xpose.msra.mxu0 %v964_v33  ;;  %640 = vmatprep.mubr.f32.mxu0 %v1253_v15 }
  0xf2   :  { %721 = vmatmul.mubr.f32.gmra.mrb[8].mxu1 %v1276_v22 }
  0xf3   :  { %1005 = vmatpush1.bf16.xpose.msra.mxu1 %v972_v34  ;;  %725 = vmatprep.mubr.f32.mxu1 %v1262_v18 }
  0xf4   :  { %641 = vmatmul.mubr.f32.gmra.mrb[10].mxu0 %v1267_v20 }
  0xf5   :  { %795 = vmatprep.mubr.f32.mxu0 %v1289_v26 }
  0xf6   :  { %726 = vmatmul.mubr.f32.gmra.mrb[10].mxu1 %v1278_v23 }
  0xf7   :  { %880 = vmatprep.mubr.f32.mxu1 %v1299_v29 }
  0xf8   :  { %796 = vmatmul.mubr.f32.vlgmr.msra.gmra.mrb[12].mxu0 %v1308_v42 }
  0xf9   :  { %800 = vmatprep.mubr.f32.mxu0 %v1291_v27 }
  0xfa   :  { %881 = vmatmul.mubr.f32.vlgmr.msra.gmra.mrb[12].mxu1 %v1312_v49 }
  0xfb   :  { %885 = vmatprep.mubr.f32.mxu1 %v1301_v30 }
  0xfc   :  { %801 = vmatmul.mubr.f32.gmra.mrb[14].mxu0 %v1310_v43 }
  0xfd   :  { %805 = vmatprep.mubr.f32.mxu0 %v1316_v52 }
  0xfe   :  { %886 = vmatmul.mubr.f32.gmra.mrb[14].mxu1 %v1314_v50 }
  0xff   :  { %890 = vmatprep.mubr.f32.mxu1 %v1322_v56 }
 0x100   :  { %806 = vmatmul.mubr.f32.gmra.mrb[16].mxu0 %v217_v0 }
 0x101   :  { %810 = vmatprep.mubr.f32.mxu0 %v1320_v55 }
 0x102   :  { %891 = vmatmul.mubr.f32.gmra.mrb[16].mxu1 %v219_v1 }
 0x103   :  { %895 = vmatprep.mubr.f32.mxu1 %v1324_v37 }
 0x104   :  { %811 = vmatmul.mubr.f32.gmra.mrb[18].mxu0 %v225_v44 }
 0x106   :  { %896 = vmatmul.mubr.f32.gmra.mrb[18].mxu1 %v227_v32 }
 0x19b   :  { %v340_v3 = vpop.f32.mrb[0].mxu0 }
 0x19c   :  { %v342_v4 = vpop.f32.mrb[1].mxu0 }
 0x19d   :  { %v410_v5 = vpop.f32.mrb[0].mxu1 }
 0x19e   :  { %v411_v6 = vadd.f32 %v410_v5, %v340_v3  ;;  %v412_v7 = vpop.f32.mrb[1].mxu1 }
 0x1ab   :  { %v480_v8 = vpop.f32.mrb[2].mxu0 }
 0x1ac   :  { %v481_v9 = vadd.f32 %v480_v8, %v411_v6  ;;  %v482_v10 = vpop.f32.mrb[3].mxu0 }
 0x1ad   :  { %v550_v12 = vpop.f32.mrb[2].mxu1 }
 0x1ae   :  { %v551_v13 = vadd.f32 %v550_v12, %v481_v9  ;;  %v552_v14 = vpop.f32.mrb[3].mxu1 }
 0x1b0   :  { %v554_v15 = vadd.f32 %v551_v13, %v229_v11 }
 0x1b2   :  { %556 = vst.msk [vmem:[#allocation8] sm:$0x3] %vm80_vm0, %v554_v15 }
 0x1b3   :  { %1096 = shalt.err (!%p1093_p0)
}
 0x1b4   :  { %s1097_s9 = scalar_lea.hbm %s1408_s4, 32 }
 0x1b5   :  { %p1098_p1 = scmp.ne.s32.totalorder %s1408_s4, %s1097_s9  ;;  %p1101_p2 = scmp.lt.u32.totalorder %s1097_s9, %s1408_s4 }
 0x1b7   :  { %p1103_p3 = pnand %p1101_p2, %p1098_p1 }
 0x1b9   :  { %1106 = shalt.err (!%p1103_p3)
}
 0x1ba   :  { %919 = dma.vmem_to_hbm [thread:$0]  %s917_s3, 32, %s1408_s4, [#allocation4]   ;;  %v557_v45 = vld [vmem:[#allocation9] sm:$0xff]  ;;  %v558_v53 = vld [vmem:[#allocation9 + $0x8] sm:$0xff]  ;;  %v559_v59 = vld [vmem:[#allocation9 + $0x10] sm:$0xff] }
 0x1bb   :  { %v627_v16 = vpop.f32.mrb[4].mxu0  ;;  %s1146_s4 = smov [#allocation9]   ;;  %v560_v32 = vld [vmem:[#allocation9 + $0x18] sm:$0xff] }
 0x1bc   :  { %v629_v17 = vpop.f32.mrb[5].mxu0  ;;  %s925_s15 = sshll.u32 %s1146_s4, 4  ;;  %s926_s15 = int_to_ptr.vmem [resolvable:$true] %s925_s15 }
 0x1bd   :  { %v712_v18 = vpop.f32.mrb[4].mxu1  ;;  %s1107_s16 = scalar_lea.vmem %s926_s15, 512  ;;  %p1112_p5 = scmp.lt.s32.totalorder %s926_s15, %s926_s15 }
 0x1be   :  { %v713_v19 = vadd.f32 %v712_v18, %v627_v16  ;;  %v714_v20 = vpop.f32.mrb[5].mxu1  ;;  %p1108_p4 = scmp.ne.s32.totalorder %s926_s15, %s1107_s16  ;;  %p1113_p6 = scmp.lt.s32.totalorder %s1107_s16, %s1107_s16 }
 0x1bf   :  { %v632_v21 = vpop.f32.mrb[6].mxu0 }
 0x1c0   :  { %v634_v22 = vpop.f32.mrb[7].mxu0  ;;  %p1114_p7 = por %p1113_p6, %p1112_p5 }
 0x1c1   :  { %v717_v23 = vpop.f32.mrb[6].mxu1 }
 0x1c2   :  { %v718_v24 = vadd.f32 %v717_v23, %v632_v21  ;;  %v719_v25 = vpop.f32.mrb[7].mxu1  ;;  %p1115_p8 = pnand %p1114_p7, %p1108_p4 }
 0x1c3   :  { %v637_v26 = vpop.f32.mrb[8].mxu0 }
 0x1c4   :  { %v639_v27 = vpop.f32.mrb[9].mxu0 }
 0x1c5   :  { %v722_v28 = vpop.f32.mrb[8].mxu1 }
 0x1c6   :  { %v723_v29 = vadd.f32 %v722_v28, %v637_v26  ;;  %v724_v30 = vpop.f32.mrb[9].mxu1 }
 0x1c7   :  { %v642_v31 = vpop.f32.mrb[10].mxu0 }
 0x1c8   :  { %v644_v36 = vpop.f32.mrb[11].mxu0 }
 0x1c9   :  { %v727_v38 = vpop.f32.mrb[10].mxu1 }
 0x1ca   :  { %v728_v39 = vadd.f32 %v727_v38, %v642_v31  ;;  %v729_v40 = vpop.f32.mrb[11].mxu1 }
 0x1cb   :  { %v797_v41 = vpop.f32.mrb[12].mxu0 }
 0x1cc   :  { %v798_v42 = vadd.f32 %v797_v41, %v713_v19  ;;  %v799_v43 = vpop.f32.mrb[13].mxu0 }
 0x1cd   :  { %v882_v46 = vpop.f32.mrb[12].mxu1 }
 0x1ce   :  { %v883_v47 = vadd.f32 %v882_v46, %v798_v42  ;;  %v884_v48 = vpop.f32.mrb[13].mxu1 }
 0x1cf   :  { %v802_v49 = vpop.f32.mrb[14].mxu0 }
 0x1d0   :  { %v901_v50 = vadd.f32 %v883_v47, %v557_v45  ;;  %v803_v51 = vadd.f32 %v802_v49, %v718_v24  ;;  %v804_v52 = vpop.f32.mrb[15].mxu0 }
 0x1d1   :  { %v887_v54 = vpop.f32.mrb[14].mxu1 }
 0x1d2   :  { %906 = vst.msk [vmem:[#allocation9] sm:$0xff] %vm82_vm1, %v901_v50  ;;  %v888_v35 = vadd.f32 %v887_v54, %v803_v51  ;;  %v889_v55 = vpop.f32.mrb[15].mxu1 }
 0x1d3   :  { %v807_v56 = vpop.f32.mrb[16].mxu0 }
 0x1d4   :  { %v902_v37 = vadd.f32 %v888_v35, %v558_v53  ;;  %v808_v57 = vadd.f32 %v807_v56, %v723_v29  ;;  %v809_v58 = vpop.f32.mrb[17].mxu0 }
 0x1d5   :  { %v892_v60 = vpop.f32.mrb[16].mxu1 }
 0x1d6   :  { %907 = vst.msk [vmem:[#allocation9 + $0x8] sm:$0xff] %vm82_vm1, %v902_v37  ;;  %v893_v61 = vadd.f32 %v892_v60, %v808_v57  ;;  %v894_v62 = vpop.f32.mrb[17].mxu1 }
 0x1d7   :  { %v812_v63 = vpop.f32.mrb[18].mxu0 }
 0x1d8   :  { %v903_v0 = vadd.f32 %v893_v61, %v559_v59  ;;  %v813_v44 = vadd.f32 %v812_v63, %v728_v39  ;;  %v814_v1 = vpop.f32.mrb[19].mxu0 }
 0x1d9   :  { %v897_v33 = vpop.f32.mrb[18].mxu1 }
 0x1da   :  { %908 = vst.msk [vmem:[#allocation9 + $0x10] sm:$0xff] %vm82_vm1, %v903_v0  ;;  %v898_v34 = vadd.f32 %v897_v33, %v813_v44  ;;  %v899_v2 = vpop.f32.mrb[19].mxu1 }
 0x1dc   :  { %v904_v3 = vadd.f32 %v898_v34, %v560_v32 }
 0x1de   :  { %909 = vst.msk [vmem:[#allocation9 + $0x18] sm:$0xff] %vm82_vm1, %v904_v3 }
 0x1df   :  { %1118 = shalt.err (!%p1115_p8)
}
 0x1e0   :  { %s1119_s19 = scalar_lea.hbm %s1409_s5, 512 }
 0x1e1   :  { %p1120_p9 = scmp.ne.s32.totalorder %s1409_s5, %s1119_s19  ;;  %p1123_p10 = scmp.lt.u32.totalorder %s1119_s19, %s1409_s5 }
 0x1e3   :  { %p1125_p11 = pnand %p1123_p10, %p1120_p9 }
 0x1e5   :  { %1128 = shalt.err (!%p1125_p11)
}
 0x1e6   :  { %s1147_s25 = smov 128   ;;  %s1148_s26 = smov 8  }
 0x1e7   :  { %931 = dma.vmem_to_hbm [thread:$0]  %s926_s15, 512, %s1409_s5, [#allocation10], %s1147_s25, %s1147_s25, %s1148_s26  }
 0x1e8   :  { %1133 = dma.done.wait [#allocation4], 32  }
 0x1e9   :  { %1134 = vsyncadd [#allocation4], 4294967264 }
 0x1ea   :  { %1135 = dma.done.wait [#allocation10], 512  }
 0x1eb   :  { %1136 = vsyncadd [#allocation10], 4294966784 }
 0x1ec   :  { %938 = vsyncpa [#allocation3], 1 }
 0x1ed   :  { %939 = vsyncpa [#allocation6], 1 }
 0x1ee   :  { %940 = vsyncpa [#allocation4], 1 }
 0x1ef   :  { %941 = vsyncpa [#allocation10], 1 }

</bundles_post_ra>
